<compile_context>
chip_gen: v7x
topology: tpu7x:2x2x1
jax: 0.10.0
libtpu: 0.0.40
codegen_flags: <defaults>
</compile_context>

<pallas_src>
import functools

import jax
import jax.numpy as jnp
import numpy as np
from jax.experimental import pallas as pl
from jax.experimental.pallas import tpu as pltpu


def _round_up(x, m):
    return (x + m - 1) // m * m


def _fused_kernel(x_ref, w_ref, b_ref, o_ref, *, nb, KH, KW, W, Lp):
    # x_ref : (nb, T*Cin, Lin)     bf16  halo-padded, spatial flattened row-major (stride W)
    # w_ref : (Cout, KH*KW*T*Cin)  bf16  conv2@conv1 fused weights (columns ordered ab,t,c)
    # b_ref : (Cout, 1)            f32   fused bias
    # o_ref : (Cout, nb*Lp)        f32   lane-dense; invalid/padded cols cropped in wrapper
    cols = []
    for i in range(nb):                               # static unroll (small nb)
        rows = []
        for a in range(KH):
            for b in range(KW):
                s = a * W + b                         # static lane shift for tap (a, b)
                rows.append(x_ref[i, :, s:s + Lp])    # (T*Cin, Lp) in-VMEM shifted slice
        cols.append(jnp.concatenate(rows, axis=0))    # (KH*KW*T*Cin, Lp)
    x_stack = cols[0] if nb == 1 else jnp.concatenate(cols, axis=1)   # (K_eff, nb*Lp)
    acc = jnp.dot(w_ref[...], x_stack, preferred_element_type=jnp.float32)
    o_ref[...] = (acc + b_ref[...]).astype(o_ref.dtype)


def spacio_temporal_conv(x, w1, b1, w2, b2, *, images_per_step=None):
    """x : (N, Cin, H, W, T) f32
       w1: (Cout, Cin, KH, KW, 1)  b1: (Cout,)   (PyTorch Conv3d layouts)
       w2: (Cout, Cout, 1, 1, T)   b2: (Cout,)
       returns (N, Cout, Ho, Wo) == SpacioTemporalConv.forward(x) with default args."""
    N, Cin, H, W, T = x.shape
    Cout, Cin_w, KH, KW, _ = w1.shape
    assert Cin_w == Cin and w2.shape == (Cout, Cout, 1, 1, T)
    Ho, Wo = H - KH + 1, W - KW + 1

    L = H * W                                   # flattened spatial (lane dim in kernel)
    Lp = _round_up(L, 128)                      # per-image lane-aligned extent
    halo = (KH - 1) * W + (KW - 1)              # max static tap shift
    Lin = _round_up(Lp + halo, 128)             # slab width incl. halo, lane aligned
    TC = T * Cin                                # time+channel packed on sublanes
    Keff = KH * KW * TC                         # fused contraction dim

    # Images per grid step: amortize the ~0.35us/step overhead while keeping several
    # "parallel" grid steps so both v7x TensorCores stay busy and DMA can pipeline.
    nb = images_per_step if images_per_step is not None else max(1, N // 4)
    Np = _round_up(N, nb)
    grid = Np // nb

    # ---- layout plumbing: single fused transpose/cast/pad pass over x ----
    # (N, Cin, H, W, T) -> (N, T*Cin, H*W) bf16, halo + lane padded.
    xt = jnp.transpose(x, (0, 4, 1, 2, 3)).reshape(N, TC, L).astype(jnp.bfloat16)
    xt = jnp.pad(xt, ((0, Np - N), (0, 0), (0, Lin - L)))
    # TODO(synk): optionally set CompilerParams(allow_input_fusion=[True, False, False]) to
    # let XLA fuse this transpose/pad/cast into the pallas-call prologue (saves one HBM pass).

    # ---- offline conv2-into-conv1 fusion (f32 product, one cast to bf16) ----
    w1m = w1[..., 0].astype(jnp.float32)                    # (Cout, Cin, KH, KW)
    w2m = w2[:, :, 0, 0, :].astype(jnp.float32)             # (Cout, Cout, T)
    # W_eff[o,a,b,t,c] = sum_m w2[o,m,t] * w1[m,c,a,b]  -> columns ordered (ab, t, c)
    w_eff = jnp.einsum('omt,mcab->oabtc', w2m, w1m).reshape(Cout, Keff).astype(jnp.bfloat16)
    b_eff = (b2.astype(jnp.float32)
             + jnp.einsum('omt,m->o', w2m, b1.astype(jnp.float32))).reshape(Cout, 1)

    kernel = functools.partial(_fused_kernel, nb=nb, KH=KH, KW=KW, W=W, Lp=Lp)

    cost = pl.CostEstimate(
        flops=2 * Cout * Keff * Np * Lp,
        transcendentals=0,
        bytes_accessed=(Np * TC * Lin * 2 + Cout * Keff * 2 + Cout * 4
                        + Cout * Np * Lp * 4),
    )

    out_flat = pl.pallas_call(
        kernel,
        out_shape=jax.ShapeDtypeStruct((Cout, Np * Lp), jnp.float32),
        grid=(grid,),
        in_specs=[
            pl.BlockSpec((nb, TC, Lin), lambda n: (n, 0, 0)),        # nb images per step
            pl.BlockSpec((Cout, Keff), lambda n: (0, 0)),            # grid-invariant fused W
            pl.BlockSpec((Cout, 1), lambda n: (0, 0)),               # fused bias
        ],
        out_specs=pl.BlockSpec((Cout, nb * Lp), lambda n: (0, n)),   # lane-dense output slab
        compiler_params=pltpu.CompilerParams(
            dimension_semantics=("parallel",)),
        cost_estimate=cost,
    )(xt, w_eff, b_eff)

    # Back to PyTorch NCHW; crop lane padding and the wrap-around rows/cols produced by the
    # flattened-spatial trick (positions with i >= Ho or j >= Wo are garbage by design).
    out = out_flat.reshape(Cout, Np, Lp)[:, :N, :L].reshape(Cout, N, H, W)
    out = jnp.transpose(out, (1, 0, 2, 3))[:, :, :Ho, :Wo]
    return out


def reference(x, w1, b1, w2, b2):
    """Pure-JAX reference with identical semantics (correctness check)."""
    N, Cin, H, W, T = x.shape
    Cout, _, KH, KW, _ = w1.shape
    Ho, Wo = H - KH + 1, W - KW + 1
    hp = jax.lax.Precision.HIGHEST
    y1 = jnp.zeros((N, Cout, Ho, Wo, T), jnp.float32)
    for a in range(KH):
        for b in range(KW):
            y1 = y1 + jnp.einsum('ncijt,oc->noijt',
                                 x[:, :, a:a + Ho, b:b + Wo, :],
                                 w1[:, :, a, b, 0], precision=hp)
    y1 = y1 + b1[None, :, None, None, None]
    y2 = jnp.einsum('ncijt,oct->noij', y1, w2[:, :, 0, 0, :], precision=hp)
    return y2 + b2[None, :, None, None]


if __name__ == "__main__":
    # Module config: in_channels=4, out_channels=8, kernel_size=3, time_size=2
    # (defaults: stride=1, padding=0, dilation=1, groups=1, bias=True)
    N, Cin, Cout, H, W = 2, 4, 8, 16, 16
    KH = KW = 3
    T = 2  # time_size; forward's final .view() requires input time dim == time_size

    key = jax.random.PRNGKey(0)
    kx, k1, kb1, k2, kb2 = jax.random.split(key, 5)
    x = jax.random.normal(kx, (N, Cin, H, W, T), jnp.float32)
    w1 = 0.1 * jax.random.normal(k1, (Cout, Cin, KH, KW, 1), jnp.float32)
    b1 = 0.1 * jax.random.normal(kb1, (Cout,), jnp.float32)
    w2 = 0.1 * jax.random.normal(k2, (Cout, Cout, 1, 1, T), jnp.float32)
    b2 = 0.1 * jax.random.normal(kb2, (Cout,), jnp.float32)

    out = jax.block_until_ready(spacio_temporal_conv(x, w1, b1, w2, b2))

    ref = reference(x, w1, b1, w2, b2)
    np.testing.assert_allclose(np.asarray(out), np.asarray(ref), rtol=2e-2, atol=2e-2)
    print("KERNEL_OK")
</pallas_src>

<mosaic_0001>
module attributes {stable_mosaic.version = 11 : i64} {
  func.func @_fused_kernel(%arg0: i32, %arg1: memref<1x8x384xbf16, #tpu.memory_space<vmem>>, %arg2: memref<8x72xbf16, #tpu.memory_space<vmem>>, %arg3: memref<8x1xf32, #tpu.memory_space<vmem>>, %arg4: memref<8x256xf32, #tpu.memory_space<vmem>>) attributes {dimension_semantics = [#tpu.dimension_semantics<parallel>], iteration_bounds = array<i64: 2>, scalar_prefetch = 0 : i64, scratch_operands = 0 : i64, tpu.core_type = #tpu.core_type<tc>, window_params = [{transform_indices = @transform_0, window_bounds = array<i64: 1, 8, 384>}, {pipeline_mode = #tpu.pipeline_mode<synchronous>, transform_indices = @transform_1, window_bounds = array<i64: 8, 72>}, {pipeline_mode = #tpu.pipeline_mode<synchronous>, transform_indices = @transform_2, window_bounds = array<i64: 8, 1>}, {transform_indices = @transform_3, window_bounds = array<i64: 8, 256>}]} {
    %c0 = arith.constant 0 : index
    %c0_0 = arith.constant 0 : index
    %c0_1 = arith.constant 0 : index
    %0 = vector.load %arg1[%c0, %c0_0, %c0_1] : memref<1x8x384xbf16, #tpu.memory_space<vmem>>, vector<1x8x256xbf16>
    %1 = vector.shape_cast %0 : vector<1x8x256xbf16> to vector<8x256xbf16>
    %c0_2 = arith.constant 0 : index
    %c0_3 = arith.constant 0 : index
    %c1 = arith.constant 1 : index
    %2 = vector.load %arg1[%c0_2, %c0_3, %c1] : memref<1x8x384xbf16, #tpu.memory_space<vmem>>, vector<1x8x256xbf16>
    %3 = vector.shape_cast %2 : vector<1x8x256xbf16> to vector<8x256xbf16>
    %c0_4 = arith.constant 0 : index
    %c0_5 = arith.constant 0 : index
    %c2 = arith.constant 2 : index
    %4 = vector.load %arg1[%c0_4, %c0_5, %c2] : memref<1x8x384xbf16, #tpu.memory_space<vmem>>, vector<1x8x256xbf16>
    %5 = vector.shape_cast %4 : vector<1x8x256xbf16> to vector<8x256xbf16>
    %c0_6 = arith.constant 0 : index
    %c0_7 = arith.constant 0 : index
    %c16 = arith.constant 16 : index
    %6 = vector.load %arg1[%c0_6, %c0_7, %c16] : memref<1x8x384xbf16, #tpu.memory_space<vmem>>, vector<1x8x256xbf16>
    %7 = vector.shape_cast %6 : vector<1x8x256xbf16> to vector<8x256xbf16>
    %c0_8 = arith.constant 0 : index
    %c0_9 = arith.constant 0 : index
    %c17 = arith.constant 17 : index
    %8 = vector.load %arg1[%c0_8, %c0_9, %c17] : memref<1x8x384xbf16, #tpu.memory_space<vmem>>, vector<1x8x256xbf16>
    %9 = vector.shape_cast %8 : vector<1x8x256xbf16> to vector<8x256xbf16>
    %c0_10 = arith.constant 0 : index
    %c0_11 = arith.constant 0 : index
    %c18 = arith.constant 18 : index
    %10 = vector.load %arg1[%c0_10, %c0_11, %c18] : memref<1x8x384xbf16, #tpu.memory_space<vmem>>, vector<1x8x256xbf16>
    %11 = vector.shape_cast %10 : vector<1x8x256xbf16> to vector<8x256xbf16>
    %c0_12 = arith.constant 0 : index
    %c0_13 = arith.constant 0 : index
    %c32 = arith.constant 32 : index
    %12 = vector.load %arg1[%c0_12, %c0_13, %c32] : memref<1x8x384xbf16, #tpu.memory_space<vmem>>, vector<1x8x256xbf16>
    %13 = vector.shape_cast %12 : vector<1x8x256xbf16> to vector<8x256xbf16>
    %c0_14 = arith.constant 0 : index
    %c0_15 = arith.constant 0 : index
    %c33 = arith.constant 33 : index
    %14 = vector.load %arg1[%c0_14, %c0_15, %c33] : memref<1x8x384xbf16, #tpu.memory_space<vmem>>, vector<1x8x256xbf16>
    %15 = vector.shape_cast %14 : vector<1x8x256xbf16> to vector<8x256xbf16>
    %c0_16 = arith.constant 0 : index
    %c0_17 = arith.constant 0 : index
    %c34 = arith.constant 34 : index
    %16 = vector.load %arg1[%c0_16, %c0_17, %c34] : memref<1x8x384xbf16, #tpu.memory_space<vmem>>, vector<1x8x256xbf16>
    %17 = vector.shape_cast %16 : vector<1x8x256xbf16> to vector<8x256xbf16>
    %18 = tpu.concatenate %1, %3, %5, %7, %9, %11, %13, %15, %17 in 0 : vector<8x256xbf16>, vector<8x256xbf16>, vector<8x256xbf16>, vector<8x256xbf16>, vector<8x256xbf16>, vector<8x256xbf16>, vector<8x256xbf16>, vector<8x256xbf16>, vector<8x256xbf16> -> vector<72x256xbf16>
    %c0_18 = arith.constant 0 : index
    %c0_19 = arith.constant 0 : index
    %19 = vector.load %arg2[%c0_18, %c0_19] : memref<8x72xbf16, #tpu.memory_space<vmem>>, vector<8x72xbf16>
    %cst = arith.constant dense<0.000000e+00> : vector<8x256xf32>
    %20 = tpu.matmul %19, %18, %cst {dimension_numbers = #tpu.dot_dimension_numbers<[1], [0], [0], [1], [0, 0, 1, 1], [], []>} : vector<8x72xbf16>, vector<72x256xbf16>, vector<8x256xf32> -> vector<8x256xf32>
    %c0_20 = arith.constant 0 : index
    %c0_21 = arith.constant 0 : index
    %21 = vector.load %arg3[%c0_20, %c0_21] : memref<8x1xf32, #tpu.memory_space<vmem>>, vector<8x1xf32>
    %22 = vector.broadcast %21 : vector<8x1xf32> to vector<8x256xf32>
    %23 = arith.addf %20, %22 : vector<8x256xf32>
    %c0_22 = arith.constant 0 : index
    %c0_23 = arith.constant 0 : index
    %24 = vector.load %arg4[%c0_22, %c0_23] : memref<8x256xf32, #tpu.memory_space<vmem>>, vector<8x256xf32>
    tpu.vector_store %arg4[%c0_22, %c0_23], %23 {strides = array<i32>} : memref<8x256xf32, #tpu.memory_space<vmem>>, vector<8x256xf32>,
    return
  }
  func.func @transform_0(%arg0: i32) -> (i32, i32, i32) {
    %c0_i32 = arith.constant 0 : i32
    %c0_i32_0 = arith.constant 0 : i32
    %c0_i32_1 = arith.constant 0 : i32
    return %arg0, %c0_i32, %c0_i32_0 : i32, i32, i32
  }
  func.func @transform_1(%arg0: i32) -> (i32, i32) {
    %c0_i32 = arith.constant 0 : i32
    %c0_i32_0 = arith.constant 0 : i32
    %c0_i32_1 = arith.constant 0 : i32
    return %c0_i32, %c0_i32_0 : i32, i32
  }
  func.func @transform_2(%arg0: i32) -> (i32, i32) {
    %c0_i32 = arith.constant 0 : i32
    %c0_i32_0 = arith.constant 0 : i32
    %c0_i32_1 = arith.constant 0 : i32
    return %c0_i32, %c0_i32_0 : i32, i32
  }
  func.func @transform_3(%arg0: i32) -> (i32, i32) {
    %c0_i32 = arith.constant 0 : i32
    %c0_i32_0 = arith.constant 0 : i32
    return %c0_i32, %arg0 : i32, i32
  }
}

</mosaic_0001>

<bundles_post_ra>
// kernel: tpu_custom_call.1
= control target key start
LH: loop header
LB: loop body
LE: loop exit
PB: predicated region body
PF: predicated region fallthrough
CT: control target
= control target key end

     0   :  { %8 = vsyncpa [#allocation3], 0  ;;  %s837_s0 = inlined_call_operand.hbm [shape: bf16[2,8,384], index: 0, kind: input, shape index: {}]   ;;  %s838_s1 = inlined_call_operand.vmem [shape: bf16[8,72], index: 1, kind: input, shape index: {}]   ;;  %s839_s2 = inlined_call_operand.vmem [shape: f32[8,1], index: 2, kind: input, shape index: {}]   ;;  %s840_s3 = inlined_call_operand.hbm [shape: f32[8,512], index: 3, kind: output, shape index: {}]  }
   0x1   :  { %10 = vsyncpa [#allocation3 + $0x1], 0 }
   0x2   :  { %11 = vsyncpa [#allocation4], 0 }
   0x3   :  { %13 = vsyncpa [#allocation4 + $0x1], 0  ;;  %s665_s12 = smov 0   ;;  %s667_s13 = smov 0  }
   0x4   :  { %s669_s14 = smov 0   ;;  %s671_s15 = smov 0  }
   0x5 LB: > { %s686_s16 = sadd.s32 4294967295, %s632_s15   ;;  %s455_s17 = sadd.s32 4294967294, %s632_s15   ;;  %s632_s15 = sphi %s671_s15, %s854_s15   ;;  %s628_s14 = sphi %s669_s14, %s853_s14   ;;  %s624_s13 = sphi %s667_s13, %s852_s13   ;;  %s620_s12 = sphi %s665_s12, %s851_s12  }
   0x6   : > { %s690_s18 = sadd.s32 1, %s632_s15   ;;  %s26_s19 = sadd.s32 1, %s628_s14 }
   0x7   : > { %s23_s20 = ssub.s32 %s632_s15, %s690_s18  ;;  %p33_p0 = scmp.ne.s32.totalorder %s628_s14, %s624_s13 }
   0x8   : > { %p24_p1 = scmp.eq.s32.totalorder %s23_s20, 0  ;;  %p34_p2 = scmp.eq.s32.totalorder %s632_s15, 0 }
   0x9   : > { %p39_p3 = scmp.ne.s32.totalorder %s624_s13, %s620_s12  ;;  %p40_p4 = scmp.eq.s32.totalorder %s686_s16, 0 }
   0xa   : > { %s702_s21 = scalar_select %p24_p1, %s628_s14, %s26_s19  }
   0xb   : > { %p35_p5 = por %p34_p2, %p33_p0  ;;  %p704_p6 = por %p40_p4, %p39_p3 }
   0xc   : > { %p105_p7 = scmp.eq.s32.totalorder %s686_s16, 1  ;;  %p111_p8 = scmp.eq.s32.totalorder %s455_s17, 1 }
   0xd   : > { %p489_p10 = scmp.lt.s32.totalorder %s632_s15, 2  ;;  %s137_s25 = sand.u32 1, %s628_s14  }
   0xe   : > { %p711_p11 = por %p105_p7, %p33_p0  ;;  %p715_p12 = por %p111_p8, %p39_p3 }
   0xf   : > { %s475_s26 = smul.u32 192, %s632_s15  ;;  %p726_p13 = pnand %p489_p10, %p35_p5 }
  0x10   : > { %s843_s23 = scalar_select %p711_p11, 1, 0 }
  0x11   : > { %s844_s24 = scalar_select %p715_p12, 1, 0 }
  0x12   : > { %s474_s27 = smul.u32 12, %s137_s25  ;;  %s724_s30 = scalar_lea.hbm %s837_s0, %s475_s26 }
  0x13   : > { %s138_s7 = scalar_lea.sflag [#allocation3], %s137_s25  ;;  %s536_s8 = scalar_lea.hbm %s724_s30, 192 }
  0x14   : > { %s141_s5 = scalar_lea.vmem [#allocation2], %s474_s27  ;;  %p537_p2 = scmp.ne.s32.totalorder %s724_s30, %s536_s8 }
  0x15   : > { %s149_s6 = sshll.u32 %s141_s5, 4  ;;  %p538_p3 = pneg %p726_p13  ;;  %s731_s6 = int_to_ptr.vmem [resolvable:$true] %s149_s6 }
  0x16   : > { %s541_s11 = scalar_lea.hbm %s837_s0, 384  ;;  %p542_p7 = scmp.lt.u32.totalorder %s724_s30, %s837_s0 }
  0x17   : > { %p539_p4 = pnand %p538_p3, %p537_p2  ;;  %p543_p8 = scmp.lt.u32.totalorder %s541_s11, %s536_s8 }
  0x18   : > { %p545_p9 = scmp.lt.u32.totalorder %s536_s8, %s724_s30 }
  0x19   : > { %p540_p5 = pneg %p539_p4  ;;  %p544_p10 = por %p543_p8, %p542_p7 }
  0x1b   : > { %p546_p0 = por %p545_p9, %p544_p10 }
  0x1d   : > { %p547_p1 = pnand %p546_p0, %p540_p5 }
  0x1f   : > { %550 = shalt.err (!%p547_p1)
}
  0x20   : > { %s551_s20 = scalar_lea.vmem %s731_s6, 192  ;;  %s634_s25 = smov [#allocation2]  }
  0x21   : > { %p552_p2 = scmp.ne.s32.totalorder %s731_s6, %s551_s20  ;;  %s556_s26 = sshll.u32 %s634_s25, 4  ;;  %s557_s26 = int_to_ptr.vmem [resolvable:$false] %s556_s26 }
  0x22   : > { %s558_s27 = scalar_lea.vmem %s557_s26, 384  ;;  %p559_p11 = scmp.lt.s32.totalorder %s731_s6, %s557_s26 }
  0x23   : > { %p554_p4 = pnand %p552_p2, %p538_p3  ;;  %p560_p7 = scmp.lt.s32.totalorder %s558_s27, %s551_s20 }
  0x25   : > { %p555_p12 = pneg %p554_p4  ;;  %p561_p8 = por %p560_p7, %p559_p11 }
  0x27   : > { %p562_p9 = pnand %p561_p8, %p555_p12 }
  0x29   : > { %565 = shalt.err (!%p562_p9)
}
  0x2a   : > { %484 = dma.hbm_to_vmem [thread:$0]  (!%p726_p13), %s724_s30, 192, %s731_s6, %s138_s7  }
  0x2b   : > { %p846_p0 = scmp.lt.s32.totalorder %s632_s15, 3  ;;  %p847_p1 = scmp.ge.s32.totalorder %s632_s15, 1 }
  0x2d   : > { %p155_p3 = pnand %p847_p1, %p846_p0 }
  0x2e   : > { %s764_s28 = sand.u32 (!%p155_p3), 1, %s624_s13  }
  0x2f   : > { %158 = sbr.rel (%p155_p3) target bundleno = 451 (0x1c3), region = 32  ;;  %s161_s5 = scalar_lea.sflag (!%p155_p3), [#allocation3], %s764_s28 }
  0x30   : > { %s476_s29 = smul.u32 (!%p155_p3), 12, %s764_s28 }
  0x32   : > { %s164_s8 = scalar_lea.vmem (!%p155_p3), [#allocation2], %s476_s29 }
  0x36   : > { %611 = dma.done.wait (%p704_p6), %s161_s5, 192  }
  0x37   : > { %613 = vsyncadd (%p704_p6), %s161_s5, 4294967104  ;;  %v190_v0 = vld [vmem:[%s164_s8] sm:$0xff]  ;;  %s635_s30 = smov 127   ;;  %v535_v3 = vld [vmem:[%s164_s8 + $0x8] ss:$0 sps:$4 sm:$0xff]   ;;  %s636_s4 = smov 126  }
  0x38   : > { %v464_v1 = vcombine.high %v190_v0, %v190_v0  ;;  %v463_v2 = vcombine.low %v190_v0, %v190_v0  ;;  %s637_s6 = smov 112   ;;  %s638_s7 = smov 111   ;;  %v642_v4 = vmov 0   ;;  %v311_v5 = vld [vmem:[%s839_s2] sm:$0xff]  ;;  %vm211_vm0 = vcmask 1039360  }
  0x39   : > { %s639_s22 = smov 110   ;;  %s640_s9 = smov 96   ;;  %359 = vmatprep.mubr.bf16.mxu0 %v642_v4  ;;  %532 = vset.pattern.permute.xlu0 %v642_v4  ;;  %vm277_vm1 = vcmask 1043456   ;;  %vm220_vm2 = vcmask 1031168   ;;  %vm229_vm3 = vcmask 916480   ;;  %vm238_vm4 = vcmask 908288  }
  0x3a   : > { %207 = vrot.lane.b32.xlu0 %v464_v1, %s635_s30  ;;  %205 = vrot.lane.b32.xlu1 %v463_v2, %s635_s30  ;;  %s641_s10 = smov 95   ;;  %s643_s11 = smov 94   ;;  %vm247_vm5 = vcmask 900096   ;;  %vm256_vm6 = vcmask 785408   ;;  %vm265_vm7 = vcmask 777216   ;;  %vm274_vm8 = vcmask 769024  }
  0x3b   : > { %v310_v55 = vld [vmem:[%s838_s1] sm:$0xf]  ;;  %vm317_vm9 = vcmask 588800   ;;  %s460_s26 = sshll.u32 %s764_s28, 4  ;;  %s473_s27 = sshll.u32 %s686_s16, 8 }
  0x3c   : > { %s186_s29 = scalar_lea.vmem [#allocation5], %s460_s26  ;;  %s371_s16 = scalar_lea.sflag [#allocation4], %s764_s28 }
  0x3d   : > { %s385_s5 = sshll.u32 %s186_s29, 4  ;;  %p848_p11 = scmp.ne.s32.totalorder %s843_s23, 0  ;;  %s795_s5 = int_to_ptr.vmem [resolvable:$true] %s385_s5 }
  0x3e   : > { %209 = vrot.lane.b32.xlu0 %v535_v3, %s635_s30  ;;  %216 = vrot.lane.b32.xlu1 %v464_v1, %s636_s4 }
  0x42   : > { %218 = vrot.lane.b32.xlu0 %v535_v3, %s636_s4  ;;  %225 = vrot.lane.b32.xlu1 %v464_v1, %s637_s6 }
  0x46   : > { %227 = vrot.lane.b32.xlu0 %v535_v3, %s637_s6  ;;  %214 = vrot.lane.b32.xlu1 %v463_v2, %s636_s4  ;;  %s793_s4 = scalar_lea.hbm %s840_s3, %s473_s27 }
  0x4a   : > { %223 = vrot.lane.b32.xlu0 %v463_v2, %s637_s6  ;;  %234 = vrot.lane.b32.xlu1 %v464_v1, %s638_s7  ;;  %s566_s6 = scalar_lea.vmem %s795_s5, 256 }
  0x4b   : > { %p567_p6 = scmp.ne.s32.totalorder %s795_s5, %s566_s6 }
  0x4d   : > { %p568_p12 = pnand %p567_p6, %p848_p11 }
  0x4e   : > { %236 = vrot.lane.b32.xlu0 %v535_v3, %s638_s7  ;;  %243 = vrot.lane.b32.xlu1 %v464_v1, %s639_s22 }
  0x4f   : > { %p569_p13 = pneg %p568_p12 }
  0x52   : > { %245 = vrot.lane.b32.xlu0 %v535_v3, %s639_s22  ;;  %232 = vrot.lane.b32.xlu1 %v463_v2, %s638_s7  ;;  %s644_s7 = smov [#allocation5]  }
  0x56   : > { %241 = vrot.lane.b32.xlu0 %v463_v2, %s639_s22  ;;  %252 = vrot.lane.b32.xlu1 %v464_v1, %s640_s9  ;;  %s570_s22 = sshll.u32 %s644_s7, 4  ;;  %s571_s22 = int_to_ptr.vmem [resolvable:$false] %s570_s22 }
  0x57   : > { %p573_p5 = scmp.lt.s32.totalorder %s795_s5, %s571_s22 }
  0x5a   : > { %254 = vrot.lane.b32.xlu0 %v535_v3, %s640_s9  ;;  %261 = vrot.lane.b32.xlu1 %v464_v1, %s641_s10 }
  0x5e   : > { %263 = vrot.lane.b32.xlu0 %v535_v3, %s641_s10  ;;  %250 = vrot.lane.b32.xlu1 %v463_v2, %s640_s9  ;;  %s572_s9 = scalar_lea.vmem %s571_s22, 512 }
  0x5f   : > { %p574_p10 = scmp.lt.s32.totalorder %s572_s9, %s566_s6 }
  0x61   : > { %p575_p2 = por %p574_p10, %p573_p5 }
  0x62   : > { %259 = vrot.lane.b32.xlu0 %v463_v2, %s641_s10  ;;  %268 = vrot.lane.b32.xlu1 %v463_v2, %s643_s11 }
  0x63   : > { %p576_p4 = pnand %p575_p2, %p569_p13 }
  0x66   : > { %270 = vrot.lane.b32.xlu0 %v464_v1, %s643_s11  ;;  %272 = vrot.lane.b32.xlu1 %v535_v3, %s643_s11 }
  0x6a   : > { %314 = vperm.xlu0 %532, %v311_v5  }
  0xac   : > { %v208_v6 = vpop.permute.xlu0 %207  ;;  %v206_v7 = vpop.permute.xlu1 %205 }
  0xad   : > { %v212_v8 = vsel %vm211_vm0, %v206_v7, %v208_v6 }
  0xae   : > { %v280_v13 = vsel %vm277_vm1, %v463_v2, %v212_v8 }
  0xb0   : > { %v210_v9 = vpop.permute.xlu0 %209  ;;  %v217_v10 = vpop.permute.xlu1 %216 }
  0xb1   : > { %v213_v11 = vsel %vm211_vm0, %v208_v6, %v210_v9 }
  0xb2   : > { %v284_v12 = vsel %vm277_vm1, %v464_v1, %v213_v11 }
  0xb3   : > { %327 = vmatprep.subr.bf16.mxu0 %v284_v12 }
  0xb4   : > { %v219_v14 = vpop.permute.xlu0 %218  ;;  %v226_v15 = vpop.permute.xlu1 %225  ;;  %328 = vmatpush1.bf16.msra.mxu0 %v280_v13 }
  0xb5   : > { %v222_v18 = vsel %vm220_vm2, %v217_v10, %v219_v14 }
  0xb8   : > { %v228_v16 = vpop.permute.xlu0 %227  ;;  %v215_v17 = vpop.permute.xlu1 %214 }
  0xb9   : > { %v231_v19 = vsel %vm229_vm3, %v226_v15, %v228_v16  ;;  %v221_v23 = vsel %vm220_vm2, %v215_v17, %v217_v10 }
  0xba   : > { %v292_v20 = vsel %vm277_vm1, %v222_v18, %v231_v19 }
  0xbb   : > { %329 = vmatprep.subr.bf16.mxu0 %v292_v20 }
  0xbc   : > { %v224_v21 = vpop.permute.xlu0 %223  ;;  %v235_v22 = vpop.permute.xlu1 %234 }
  0xbd   : > { %v230_v24 = vsel %vm229_vm3, %v224_v21, %v226_v15 }
  0xbe   : > { %v288_v25 = vsel %vm277_vm1, %v221_v23, %v230_v24 }
  0xbf   : > { %330 = vmatpush1.bf16.msra.mxu0 %v288_v25 }
  0xc0   : > { %v237_v26 = vpop.permute.xlu0 %236  ;;  %v244_v27 = vpop.permute.xlu1 %243 }
  0xc1   : > { %v240_v30 = vsel %vm238_vm4, %v235_v22, %v237_v26 }
  0xc4   : > { %v246_v28 = vpop.permute.xlu0 %245  ;;  %v233_v29 = vpop.permute.xlu1 %232 }
  0xc5   : > { %v249_v31 = vsel %vm247_vm5, %v244_v27, %v246_v28  ;;  %v239_v35 = vsel %vm238_vm4, %v233_v29, %v235_v22 }
  0xc6   : > { %v300_v32 = vsel %vm277_vm1, %v240_v30, %v249_v31 }
  0xc7   : > { %331 = vmatprep.subr.bf16.mxu0 %v300_v32 }
  0xc8   : > { %v242_v33 = vpop.permute.xlu0 %241  ;;  %v253_v34 = vpop.permute.xlu1 %252 }
  0xc9   : > { %v248_v36 = vsel %vm247_vm5, %v242_v33, %v244_v27 }
  0xca   : > { %v296_v37 = vsel %vm277_vm1, %v239_v35, %v248_v36 }
  0xcb   : > { %332 = vmatpush1.bf16.msra.mxu0 %v296_v37 }
  0xcc   : > { %v255_v38 = vpop.permute.xlu0 %254  ;;  %v262_v39 = vpop.permute.xlu1 %261 }
  0xcd   : > { %v258_v42 = vsel %vm256_vm6, %v253_v34, %v255_v38 }
  0xd0   : > { %v264_v40 = vpop.permute.xlu0 %263  ;;  %v251_v41 = vpop.permute.xlu1 %250 }
  0xd1   : > { %v267_v43 = vsel %vm265_vm7, %v262_v39, %v264_v40  ;;  %v257_v47 = vsel %vm256_vm6, %v251_v41, %v253_v34 }
  0xd2   : > { %v308_v44 = vsel %vm277_vm1, %v258_v42, %v267_v43 }
  0xd3   : > { %333 = vmatprep.subr.bf16.mxu0 %v308_v44 }
  0xd4   : > { %v260_v45 = vpop.permute.xlu0 %259  ;;  %v269_v46 = vpop.permute.xlu1 %268 }
  0xd5   : > { %v266_v48 = vsel %vm265_vm7, %v260_v45, %v262_v39 }
  0xd6   : > { %v304_v49 = vsel %vm277_vm1, %v257_v47, %v266_v48 }
  0xd7   : > { %334 = vmatpush1.bf16.msra.mxu0 %v304_v49 }
  0xd8   : > { %v271_v50 = vpop.permute.xlu0 %270  ;;  %v273_v51 = vpop.permute.xlu1 %272 }
  0xd9   : > { %v275_v52 = vsel %vm274_vm8, %v269_v46, %v271_v50  ;;  %v276_v53 = vsel %vm274_vm8, %v271_v50, %v273_v51 }
  0xda   : > { %466 = vmatprep.subr.msk.bf16.mxu0 %vm277_vm1, %v276_v53  ;;  %v322_v54 = vsel %vm277_vm1, %v275_v52, 0 }
  0xdb   : > { %336 = vmatpush1.bf16.msra.mxu0 %v322_v54 }
  0xde   : > { %467 = vmatmul.mubr.msk.bf16.vlgmr.msra.gmra.mrb[0].mxu0 %vm317_vm9, %v310_v55 }
  0xe9   : > { %v315_v56 = vpop.permute.xlu0 %314 }
 0x1b1   : > { %v361_v57 = vpop.f32.mrb[0].mxu0 }
 0x1b2   : > { %v362_v58 = vadd.f32 %v361_v57, %v315_v56  ;;  %v363_v59 = vpop.f32.mrb[1].mxu0 }
 0x1b3   : > { %v364_v60 = vadd.f32 %v363_v59, %v315_v56  ;;  %v365_v61 = vpop.f32.mrb[2].mxu0 }
 0x1b4   : > { %368 = vst [vmem:[%s186_s29] sm:$0xff] %v362_v58  ;;  %v366_v62 = vpop.f32.mrb[3].mxu0 }
 0x1b5   : > { %369 = vst [vmem:[%s186_s29 + $0x8] sm:$0xff] %v364_v60 }
 0x1b6   : > { %579 = shalt.err (!%p576_p4)
}
 0x1b7   : > { %s580_s28 = scalar_lea.hbm %s793_s4, 256  ;;  %s584_s17 = scalar_lea.hbm %s840_s3, 512 }
 0x1b8   : > { %p581_p7 = scmp.ne.s32.totalorder %s793_s4, %s580_s28  ;;  %p585_p0 = scmp.lt.u32.totalorder %s793_s4, %s840_s3 }
 0x1b9   : > { %p586_p1 = scmp.lt.u32.totalorder %s584_s17, %s580_s28  ;;  %p588_p6 = scmp.lt.u32.totalorder %s580_s28, %s793_s4 }
 0x1ba   : > { %p582_p8 = pnand %p581_p7, %p848_p11 }
 0x1bb   : > { %p587_p3 = por %p586_p1, %p585_p0 }
 0x1bc   : > { %p583_p9 = pneg %p582_p8 }
 0x1bd   : > { %p589_p12 = por %p588_p6, %p587_p3 }
 0x1bf   : > { %p590_p13 = pnand %p589_p12, %p583_p9 }
 0x1c1   : > { %593 = shalt.err (!%p590_p13)
}
 0x1c2   : > { %479 = dma.vmem_to_hbm [thread:$0]  (%p848_p11), %s795_s5, 256, %s793_s4, %s371_s16  }
 0x1c3 PF: > { %s397_s25 = sand.u32 1, %s620_s12   ;;  %p849_p5 = scmp.ne.s32.totalorder %s844_s24, 0 }
 0x1c4   : > { %p850_p10 = scmp.ge.s32.totalorder %s632_s15, 2  ;;  %s398_s26 = scalar_lea.sflag [#allocation4], %s397_s25 }
 0x1c6   : > { %p486_p2 = pnand %p850_p10, %p849_p5 }
 0x1c8   : > { %615 = dma.done.wait (!%p486_p2), %s398_s26, 256  }
 0x1c9   : > { %617 = vsyncadd (!%p486_p2), %s398_s26, 4294967040  ;;  %p16_p4 = scmp.ge.s32.totalorder %s690_s18, 4   ;;  %s851_s12 = smov %s624_s13 }
 0x1ca   : > { %s852_s13 = smov %s628_s14  ;;  %s853_s14 = smov %s702_s21 }
 0x1cb   : > { %s854_s15 = smov %s690_s18  ;;  %18 = sbr.rel (!%p16_p4) target bundleno = 5 (0x5), region = 77 }
 0x1d2   :  { %403 = vsyncpa [#allocation3], 1 }
 0x1d3   :  { %405 = vsyncpa [#allocation3 + $0x1], 1 }
 0x1d4   :  { %406 = vsyncpa [#allocation4], 1 }
 0x1d5   :  { %408 = vsyncpa [#allocation4 + $0x1], 1 }

</bundles_post_ra>
